<compile_context>
chip_gen: v5e
topology: v5e:2x2
jax: 0.10.0
libtpu: 0.0.40
codegen_flags: <defaults>
</compile_context>

<pallas_src>
import functools

import jax
import jax.numpy as jnp
from jax import lax
from jax.experimental import pallas as pl
from jax.experimental.pallas import tpu as pltpu

_LANE = 128      # lane width (last dim)
_TM = 2048       # tile rows for the tiled path (multiple of 16 -> bf16 OK)
_NCORES = 2      # leading "parallel" grid axis; 2 TCs on v7x, no-op on v5e/v6e


# --------------------------------------------------------------------------
# Per-element loss, specialized on the static target constant (0.0 / 1.0)
# --------------------------------------------------------------------------
def _elem_loss(x, tgt, use_lsgan):
    if use_lsgan:
        # MSELoss against a constant target.
        if tgt == 1.0:
            d = x - 1.0
            return d * d
        return x * x
    # BCELoss against a constant target, with PyTorch's -100 log clamp.
    if tgt == 1.0:
        return -jnp.maximum(jnp.log(x), -100.0)
    return -jnp.maximum(jnp.log(1.0 - x), -100.0)


# --------------------------------------------------------------------------
# Single-block kernel (small predictions): whole (rows, 128) slab, no grid.
# --------------------------------------------------------------------------
def _gan_loss_kernel_single(x_ref, o_ref, *, tgt, inv_n, use_lsgan):
    x = x_ref[...].astype(jnp.float32)
    e = _elem_loss(x, tgt, use_lsgan)          # padded tail lanes hold tgt -> 0
    o_ref[...] = jnp.sum(e, keepdims=True) * inv_n


# --------------------------------------------------------------------------
# Tiled kernel (large predictions): grid = (ncore "parallel", steps "arbitrary")
# --------------------------------------------------------------------------
def _gan_loss_kernel_tiled(x_ref, o_ref, acc_ref, *,
                           tgt, inv_n, use_lsgan, rows, tm, steps, mask_rows):
    s = pl.program_id(1)

    @pl.when(s == 0)
    def _():
        acc_ref[...] = jnp.zeros_like(acc_ref)

    x = x_ref[...].astype(jnp.float32)
    e = _elem_loss(x, tgt, use_lsgan)

    if mask_rows:
        # Zero rows past the logical end: the ragged last tile and any
        # clamped duplicate tile at the end of the second core's range.
        c = pl.program_id(0)
        r0 = (c * steps + s) * tm
        row_ids = r0 + lax.broadcasted_iota(jnp.int32, (tm, _LANE), 0)
        e = jnp.where(row_ids < rows, e, 0.0)

    # Vreg-shaped partial accumulation: pure VALU adds; no per-step XLU
    # reduce and no per-step scalar store.  Also improves f32 accuracy
    # (1024 lane-wise partials).
    acc_ref[...] += jnp.sum(e.reshape(tm // 8, 8, _LANE), axis=0)

    @pl.when(s == steps - 1)
    def _():
        o_ref[...] = jnp.sum(acc_ref[...], keepdims=True) * inv_n


# --------------------------------------------------------------------------
# Wrapper (glue: flatten, minimal pad, tile, launch)
# --------------------------------------------------------------------------
def gan_loss(prediction, target_is_real, use_lsgan=True):
    """Matches GANLoss.forward: returns a scalar f32."""
    tval = 1.0 if target_is_real else 0.0
    n = prediction.size
    flat = prediction.reshape(-1)                 # native dtype; cast in-kernel

    # Pad only to the next lane row (<= 127 elems) with the target value,
    # which contributes exactly 0 loss on every specialized path.
    rem = n % _LANE
    if rem:
        flat = jnp.pad(flat, (0, _LANE - rem), constant_values=tval)
    rows = flat.shape[0] // _LANE
    x2 = flat.reshape(rows, _LANE)

    tgt = float(tval)
    inv_n = 1.0 / float(n)
    lsgan = bool(use_lsgan)

    if rows <= _TM:
        # Common small-PatchGAN case: single block, no grid/accumulator cost.
        kernel = functools.partial(_gan_loss_kernel_single,
                                   tgt=tgt, inv_n=inv_n, use_lsgan=lsgan)
        out = pl.pallas_call(
            kernel,
            out_shape=jax.ShapeDtypeStruct((1, 1), jnp.float32),
        )(x2)
        return out[0, 0]

    # Large outputs: tiled reduction, row range sharded across TensorCores.
    tm = _TM
    total_blocks = pl.cdiv(rows, tm)
    steps = pl.cdiv(total_blocks, _NCORES)
    last_block = total_blocks - 1
    mask_rows = (rows % tm != 0) or (total_blocks % _NCORES != 0)

    def x_map(c, s):
        # Clamp so the DMA never walks past the array; clamped duplicate
        # blocks are fully masked out inside the kernel.
        return (jnp.minimum(c * steps + s, last_block), 0)

    kernel = functools.partial(_gan_loss_kernel_tiled,
                               tgt=tgt, inv_n=inv_n, use_lsgan=lsgan,
                               rows=rows, tm=tm, steps=steps,
                               mask_rows=mask_rows)
    partials = pl.pallas_call(
        kernel,
        out_shape=jax.ShapeDtypeStruct((_NCORES, 1, 1), jnp.float32),
        grid=(_NCORES, steps),
        in_specs=[pl.BlockSpec((tm, _LANE), x_map)],
        out_specs=pl.BlockSpec((None, 1, 1), lambda c, s: (c, 0, 0)),
        scratch_shapes=[pltpu.VMEM((8, _LANE), jnp.float32)],
        compiler_params=pltpu.CompilerParams(
            dimension_semantics=("parallel", "arbitrary")),
    )(x2)
    return jnp.sum(partials)


# --------------------------------------------------------------------------
# Pure-JAX reference for validation
# --------------------------------------------------------------------------
def _ref_gan_loss(prediction, target_is_real, use_lsgan=True):
    p = prediction.astype(jnp.float32)
    t = jnp.ones_like(p) if target_is_real else jnp.zeros_like(p)
    if use_lsgan:
        return jnp.mean((p - t) ** 2)
    log_p = jnp.maximum(jnp.log(p), -100.0)
    log_1mp = jnp.maximum(jnp.log(1.0 - p), -100.0)
    return jnp.mean(-(t * log_p + (1.0 - t) * log_1mp))


if __name__ == "__main__":
    key = jax.random.PRNGKey(0)
    k1, k2, k3, k4 = jax.random.split(key, 4)

    # Small PatchGAN-style output -> single-block path.
    pred_small = jax.random.normal(k1, (2, 4, 16, 16), dtype=jnp.float32)
    pred_small_bf16 = pred_small.astype(jnp.bfloat16)       # native-dtype ingest
    pred_prob = jax.nn.sigmoid(pred_small)                   # BCE needs (0, 1)

    # Larger outputs -> tiled megacore path (aligned / ragged / clamped-dup).
    pred_big = jax.random.normal(k2, (2, 4, 256, 256), dtype=jnp.float32)
    pred_ragged = jax.random.normal(k3, (3, 4, 211, 181), dtype=jnp.float32)
    pred_ragged_prob = jax.nn.sigmoid(pred_ragged)
    pred_odd = jax.random.normal(k4, (2, 4, 256, 320), dtype=jnp.float32)

    loss_fn = jax.jit(gan_loss, static_argnames=("target_is_real", "use_lsgan"))

    checks = [
        (pred_small, True, True),
        (pred_small, False, True),
        (pred_small_bf16, True, True),
        (pred_prob, True, False),
        (pred_prob, False, False),
        (pred_big, True, True),
        (pred_ragged, False, True),
        (pred_ragged_prob, True, False),
        (pred_odd, True, True),
    ]
    for pred, is_real, lsgan in checks:
        got = loss_fn(pred, target_is_real=is_real, use_lsgan=lsgan)
        jax.block_until_ready(got)
        want = _ref_gan_loss(pred, is_real, lsgan)
        assert got.shape == () and bool(jnp.isfinite(got))
        assert jnp.allclose(got, want, rtol=1e-5, atol=1e-6), (
            pred.shape, is_real, lsgan, got, want)

    print("KERNEL_OK")
</pallas_src>

<mosaic_0001>
module attributes {stable_mosaic.version = 11 : i64} {
  func.func @_gan_loss_kernel_single(%arg0: memref<16x128xf32, #tpu.memory_space<vmem>>, %arg1: memref<1x1xf32, #tpu.memory_space<vmem>>) attributes {dimension_semantics = [], scalar_prefetch = 0 : i64, scratch_operands = 0 : i64, tpu.core_type = #tpu.core_type<tc>} {
    %c0 = arith.constant 0 : index
    %c0_0 = arith.constant 0 : index
    %0 = vector.load %arg0[%c0, %c0_0] : memref<16x128xf32, #tpu.memory_space<vmem>>, vector<16x128xf32>
    %cst = arith.constant 1.000000e+00 : f32
    %1 = vector.broadcast %cst : f32 to vector<16x128xf32>
    %2 = arith.subf %0, %1 : vector<16x128xf32>
    %3 = arith.mulf %2, %2 : vector<16x128xf32>
    %4 = vector.shape_cast %3 : vector<16x128xf32> to vector<1x16x128xf32>
    %cst_1 = arith.constant dense<0.000000e+00> : vector<1xf32>
    %5 = vector.multi_reduction <add>, %4, %cst_1 [1, 2] : vector<1x16x128xf32> to vector<1xf32>
    %6 = vector.shape_cast %5 : vector<1xf32> to vector<1x1x1xf32>
    %7 = vector.extract %6[0, 0, 0] : f32 from vector<1x1x1xf32>
    %8 = vector.broadcast %7 : f32 to vector<1x1xf32>
    %cst_2 = arith.constant 4.8828125E-4 : f32
    %9 = vector.broadcast %cst_2 : f32 to vector<1x1xf32>
    %10 = arith.mulf %8, %9 : vector<1x1xf32>
    %c0_3 = arith.constant 0 : index
    %c0_4 = arith.constant 0 : index
    %11 = vector.load %arg1[%c0_3, %c0_4] : memref<1x1xf32, #tpu.memory_space<vmem>>, vector<1x1xf32>
    tpu.vector_store %arg1[%c0_3, %c0_4], %10 {strides = array<i32>} : memref<1x1xf32, #tpu.memory_space<vmem>>, vector<1x1xf32>,
    return
  }
}

</mosaic_0001>

<bundles_post_ra>
// kernel: gan_loss.1
= control target key start
LH: loop header
LB: loop body
LE: loop exit
PB: predicated region body
PF: predicated region fallthrough
CT: control target
= control target key end

     0   :  { %s96_s0 = inlined_call_operand.vmem [shape: f32[16,128], index: 0, kind: input, shape index: {}]   ;;  %s97_s1 = inlined_call_operand.hbm [shape: f32[1,1], index: 1, kind: output, shape index: {}]  }
   0x1   :  { %v9_v0 = vld [vmem:[%s96_s0] sm:$0xff]  ;;  %v10_v1 = vld [vmem:[%s96_s0 + $0x8] sm:$0xff] }
   0x2   :  { %6 = vsyncpa [#allocation3], 0  ;;  %v45_v2 = vadd.f32 -1.0, %v9_v0  ;;  %v46_v3 = vadd.f32 -1.0, %v10_v1  ;;  %s76_s10 = smov [#allocation2]   ;;  %s36_s0 = sshll.u32 %s97_s1, 4  ;;  %s37_s0 = int_to_ptr.hbm [resolvable:$true] %s36_s0 }
   0x3   :  { %s34_s11 = sshll.u32 %s76_s10, 4  ;;  %vm27_vm0 = vcmask 0   ;;  %s35_s11 = int_to_ptr.vmem [resolvable:$true] %s34_s11 }
   0x4   :  { %v13_v4 = vmul.f32 %v45_v2, %v45_v2  ;;  %v14_v5 = vmul.f32 %v46_v3, %v46_v3 }
   0x6   :  { %v15_v6 = vadd.f32 %v14_v5, %v13_v4 }
   0x8   :  { %16 = vadd.xlane.f32.xlu0 %v15_v6 }
  0x7b   :  { %v17_v7 = vpop.xlane.xlu0 %16 }
  0x7c   :  { %v18_v8 = vrot.slane %v17_v7, 4 }
  0x7e   :  { %v19_v9 = vadd.f32 %v18_v8, %v17_v7 }
  0x80   :  { %v20_v10 = vrot.slane %v19_v9, 2 }
  0x82   :  { %v21_v11 = vadd.f32 %v20_v10, %v19_v9 }
  0x84   :  { %v22_v12 = vrot.slane %v21_v11, 1 }
  0x86   :  { %v23_v13 = vadd.f32 %v22_v12, %v21_v11 }
  0x88   :  { %47 = vpush %v23_v13 }
  0xb9   :  { %s48_s14 = spop %47 }
  0xba   :  { %v25_v14 = vstv %s48_s14 }
  0xbb   :  { %v26_v15 = vmul.f32 0.00048828125, %v25_v14 }
  0xbd   :  { %28 = vst.msk [vmem:[#allocation2] sm:$0x1] %vm27_vm0, %v26_v15 }
  0xbe   :  { %39 = dma.vmem_to_hbm [thread:$0]  %s35_s11, 16, %s37_s0, [#allocation3]  }
  0xbf   :  { %74 = dma.done.wait [#allocation3], 16  }
  0xc0   :  { %75 = vsyncadd [#allocation3], 4294967280 }
  0xc1   :  { %44 = vsyncpa [#allocation3], 1 }

</bundles_post_ra>
